<compile_context>
chip_gen: v7x
topology: tpu7x:2x2x1
jax: 0.10.0
libtpu: 0.0.40
codegen_flags: <defaults>
</compile_context>

<pallas_src>
import functools

import jax
import jax.numpy as jnp
from jax.experimental import pallas as pl
from jax.experimental.pallas import tpu as pltpu


# ----------------------------- hardware query --------------------------------

@functools.lru_cache(maxsize=None)
def _vmem_capacity_bytes() -> int:
    """Physical VMEM per core; conservative (v7x-sized) fallback if unknown."""
    try:
        info = pltpu.get_tpu_info()
        cap = getattr(info, "vmem_capacity_bytes", None)
        if cap:
            return int(cap)
    except Exception:
        pass
    return 64 << 20


def _tile_caps(dtype):
    """Generation-aware tile caps (elements) and VMEM budget (bytes)."""
    vmem = _vmem_capacity_bytes()
    itemsize = jnp.dtype(dtype).itemsize
    k_scale = max(1, 4 // itemsize)          # narrower operands -> deeper K tiles
    if vmem >= (96 << 20):                   # v5e / v6e: 128 MiB physical VMEM
        return dict(tm=512, tn=512, tk=2048 * k_scale,
                    vmem_limit=100 << 20, split_for_cores=False)
    # v7x-class: 64 MiB physical VMEM, 2 TensorCores.
    return dict(tm=512, tn=512, tk=1024 * k_scale,
                vmem_limit=48 << 20, split_for_cores=True)


# ------------------------------ tiling helpers --------------------------------

def _round_up(x: int, m: int) -> int:
    return ((x + m - 1) // m) * m


def _cdiv(a: int, b: int) -> int:
    return (a + b - 1) // b


def _sublane(dtype) -> int:
    # 8 rows per vreg for 32-bit, 16 for bf16, 32 for int8.
    return max(8, 32 // jnp.dtype(dtype).itemsize)


def _plan_extent(size: int, align: int, cap: int) -> int:
    """Minimal padded extent: align-rounded; split near-evenly only if > cap."""
    e = _round_up(max(int(size), 1), align)
    if e <= cap:
        return e
    g = _cdiv(e, cap)
    return g * _round_up(_cdiv(e, g), align)


def _pick_tile(extent: int, align: int, cap: int) -> int:
    """Largest multiple of `align` that divides `extent` and is <= cap."""
    nblocks = extent // align
    for d in range(min(nblocks, max(cap // align, 1)), 0, -1):
        if nblocks % d == 0:
            return d * align
    return align


def _split_tile(extent: int, align: int):
    """Largest align-multiple divisor of `extent` giving >= 2 blocks, or None."""
    nblocks = extent // align
    cap = extent // 2
    for d in range(min(nblocks, cap // align), 0, -1):
        if nblocks % d == 0:
            return d * align
    return None


# ------------------------------ Pallas kernels --------------------------------

def _linear_kernel_single_k(*refs, has_bias: bool):
    # refs = (x_ref, w_ref, [b_ref,] o_ref) ; whole K in one MXU pass.
    if has_bias:
        x_ref, w_ref, b_ref, o_ref = refs
    else:
        x_ref, w_ref, o_ref = refs
        b_ref = None
    acc = jnp.dot(x_ref[...], w_ref[...], preferred_element_type=jnp.float32)
    if has_bias:
        acc = acc + b_ref[...].astype(jnp.float32)
    o_ref[...] = acc.astype(o_ref.dtype)


def _linear_kernel_multi_k(*refs, has_bias: bool):
    # refs = (x_ref, w_ref, [b_ref,] o_ref, acc_ref) ; K innermost (axis 2).
    if has_bias:
        x_ref, w_ref, b_ref, o_ref, acc_ref = refs
    else:
        x_ref, w_ref, o_ref, acc_ref = refs
        b_ref = None

    k = pl.program_id(2)
    part = jnp.dot(x_ref[...], w_ref[...], preferred_element_type=jnp.float32)

    # Direct assign on the first step (no zero-init store + read-add-store).
    @pl.when(k == 0)
    def _():
        acc_ref[...] = part

    @pl.when(k > 0)
    def _():
        acc_ref[...] += part

    # Bias is a one-time VPU epilogue on the final K step.
    @pl.when(k == pl.num_programs(2) - 1)
    def _():
        acc = acc_ref[...]
        if has_bias:
            acc = acc + b_ref[...].astype(jnp.float32)
        o_ref[...] = acc.astype(o_ref.dtype)


# -------------------------- one-time weight packing ----------------------------

def pack_linear_params(weight, bias=None, compute_dtype=None):
    """Transpose + minimally pad the static parameters ONCE (outside hot path).

    weight: (out_features, in_features) -> packed (K_pad, N_pad), K_pad/N_pad
            are 128-aligned (split near-evenly only if beyond the tile cap).
    bias:   (out_features,) or None     -> packed (1, N_pad) in f32, or None.
    compute_dtype: optional MXU operand dtype (e.g. jnp.bfloat16 fast path).
    """
    out_f, in_f = weight.shape
    cdt = jnp.dtype(compute_dtype) if compute_dtype is not None else weight.dtype
    caps = _tile_caps(cdt)

    kp = _plan_extent(in_f, 128, caps["tk"])
    np_ = _plan_extent(out_f, 128, caps["tn"])

    w = weight.astype(cdt)
    w_packed = jnp.zeros((kp, np_), cdt).at[:in_f, :out_f].set(w.T)
    b_packed = None
    if bias is not None:
        b_packed = (
            jnp.zeros((1, np_), jnp.float32).at[0, :out_f].set(bias.astype(jnp.float32))
        )
    return w_packed, b_packed


# ---------------------------------- forward ------------------------------------

@functools.partial(jax.jit, static_argnames=("out_features",))
def pallas_linear(x, w_packed, b_packed=None, *, out_features: int):
    """y = x @ weight.T (+ bias) using pre-packed weights.

    x:        (*, in_features)
    w_packed: (K_pad, N_pad)  from pack_linear_params
    b_packed: (1, N_pad) f32 or None
    """
    *lead, in_f = x.shape
    kp, np_ = w_packed.shape
    out_dtype = x.dtype
    cdt = w_packed.dtype

    m = 1
    for d in lead:
        m *= int(d)

    xc = x.astype(cdt) if x.dtype != cdt else x
    x2 = xc.reshape(m, in_f)

    caps = _tile_caps(cdt)
    sub = _sublane(cdt)

    # Minimal padding: M to the sublane multiple, tiles as divisors of extents.
    mp = _plan_extent(m, sub, caps["tm"])
    tm = _pick_tile(mp, sub, caps["tm"])
    tk = _pick_tile(kp, 128, caps["tk"])
    tn = _pick_tile(np_, 128, caps["tn"])

    # Keep >= 2 parallel output blocks so both v7x TensorCores get work.
    if caps["split_for_cores"] and (mp // tm) * (np_ // tn) == 1:
        tn_s = _split_tile(np_, 128)
        if tn_s is not None:
            tn = tn_s
        else:
            tm_s = _split_tile(mp, sub)
            if tm_s is not None:
                tm = tm_s

    gm, gn, gk = mp // tm, np_ // tn, kp // tk

    # Only materialize a padded copy of x when the shape actually needs it;
    # K padding is zero so it cannot pollute the accumulator.
    if (mp, kp) != (m, in_f):
        x2 = jnp.zeros((mp, kp), cdt).at[:m, :in_f].set(x2)

    has_bias = b_packed is not None

    in_item = jnp.dtype(cdt).itemsize
    out_item = jnp.dtype(out_dtype).itemsize
    cost = pl.CostEstimate(
        flops=2 * mp * np_ * kp,
        transcendentals=0,
        bytes_accessed=(mp * kp * gn + kp * np_ * gm) * in_item
        + mp * np_ * out_item
        + (np_ * 4 if has_bias else 0),
    )
    # Double-buffered tiles (+ f32 accumulator when K is tiled), with headroom.
    tile_bytes = (
        2 * (tm * tk + tk * tn) * in_item
        + 2 * tm * tn * out_item
        + (2 * tn * 4 if has_bias else 0)
        + (tm * tn * 4 if gk > 1 else 0)
    )
    vmem_limit = int(min(caps["vmem_limit"], max(2 * tile_bytes, 32 << 20)))

    operands = [x2, w_packed]
    if gk == 1:
        # Single K step: 2-D all-parallel grid, no accumulator scratch at all.
        in_specs = [
            pl.BlockSpec((tm, kp), lambda i, j: (i, 0)),
            pl.BlockSpec((kp, tn), lambda i, j: (0, j)),
        ]
        if has_bias:
            in_specs.append(pl.BlockSpec((1, tn), lambda i, j: (0, j)))
            operands.append(b_packed)
        grid = (gm, gn)
        out_specs = pl.BlockSpec((tm, tn), lambda i, j: (i, j))
        scratch = []
        kernel = functools.partial(_linear_kernel_single_k, has_bias=has_bias)
        dim_sem = ("parallel", "parallel")
    else:
        in_specs = [
            pl.BlockSpec((tm, tk), lambda i, j, k: (i, k)),
            pl.BlockSpec((tk, tn), lambda i, j, k: (k, j)),
        ]
        if has_bias:
            in_specs.append(pl.BlockSpec((1, tn), lambda i, j, k: (0, j)))
            operands.append(b_packed)
        grid = (gm, gn, gk)
        out_specs = pl.BlockSpec((tm, tn), lambda i, j, k: (i, j))
        scratch = [pltpu.VMEM((tm, tn), jnp.float32)]
        kernel = functools.partial(_linear_kernel_multi_k, has_bias=has_bias)
        dim_sem = ("parallel", "parallel", "arbitrary")

    out_pad = pl.pallas_call(
        kernel,
        out_shape=jax.ShapeDtypeStruct((mp, np_), out_dtype),
        grid_spec=pltpu.PrefetchScalarGridSpec(
            num_scalar_prefetch=0,
            grid=grid,
            in_specs=in_specs,
            out_specs=out_specs,
            scratch_shapes=scratch,
        ),
        compiler_params=pltpu.CompilerParams(
            dimension_semantics=dim_sem,
            vmem_limit_bytes=vmem_limit,
        ),
        cost_estimate=cost,
    )(*operands)

    return out_pad[:m, :out_features].reshape(*lead, out_features)


# ------------------------- deterministic parameters ----------------------------

def init_linear_params(key, in_features: int, out_features: int, bias: bool = True):
    """Matches PyTorch init: U(-k, k) with k = 1/sqrt(in_features)."""
    k = 1.0 / jnp.sqrt(jnp.float32(in_features))
    kw, kb = jax.random.split(key)
    weight = jax.random.uniform(
        kw, (out_features, in_features), jnp.float32, minval=-k, maxval=k
    )
    b = (
        jax.random.uniform(kb, (out_features,), jnp.float32, minval=-k, maxval=k)
        if bias
        else None
    )
    return weight, b


# ----------------------------------- main ---------------------------------------

if __name__ == "__main__":
    key = jax.random.PRNGKey(0)
    k_x, k_p, k_x2, k_p2, k_x3, k_p3 = jax.random.split(key, 6)
    HI = jax.lax.Precision.HIGHEST

    # --- primary small test (single K step fast path) ---
    batch, seq, in_f, out_f = 2, 8, 32, 64
    x = jax.random.normal(k_x, (batch, seq, in_f), jnp.float32)
    weight, bias = init_linear_params(k_p, in_f, out_f, bias=True)
    w_packed, b_packed = pack_linear_params(weight, bias)
    y = jax.block_until_ready(pallas_linear(x, w_packed, b_packed, out_features=out_f))
    y_ref = jnp.einsum("...i,oi->...o", x, weight, precision=HI) + bias
    assert y.shape == (batch, seq, out_f), y.shape
    assert jnp.allclose(y, y_ref, atol=1e-5, rtol=1e-5), float(jnp.max(jnp.abs(y - y_ref)))

    # --- no-bias path ---
    w_nb, _ = pack_linear_params(weight, None)
    y_nb = jax.block_until_ready(pallas_linear(x, w_nb, None, out_features=out_f))
    y_nb_ref = jnp.einsum("...i,oi->...o", x, weight, precision=HI)
    assert jnp.allclose(y_nb, y_nb_ref, atol=1e-5, rtol=1e-5)

    # --- ragged shapes: minimal (8/128) padding + multi-N-block grid ---
    in_f2, out_f2 = 600, 300
    x2 = jax.random.normal(k_x2, (2, 136, in_f2), jnp.float32)
    w2, b2 = init_linear_params(k_p2, in_f2, out_f2, bias=True)
    w2p, b2p = pack_linear_params(w2, b2)
    y2 = jax.block_until_ready(pallas_linear(x2, w2p, b2p, out_features=out_f2))
    y2_ref = jnp.einsum("...i,oi->...o", x2, w2, precision=HI) + b2
    assert y2.shape == (2, 136, out_f2), y2.shape
    assert jnp.allclose(y2, y2_ref, atol=1e-4, rtol=1e-4), float(
        jnp.max(jnp.abs(y2 - y2_ref))
    )

    # --- wide K: exercises the multi-K accumulator kernel ---
    in_f3, out_f3 = 2500, 128
    x3 = jax.random.normal(k_x3, (24, in_f3), jnp.float32)
    w3, b3 = init_linear_params(k_p3, in_f3, out_f3, bias=True)
    w3p, b3p = pack_linear_params(w3, b3)
    y3 = jax.block_until_ready(pallas_linear(x3, w3p, b3p, out_features=out_f3))
    y3_ref = jnp.einsum("...i,oi->...o", x3, w3, precision=HI) + b3
    assert y3.shape == (24, out_f3), y3.shape
    assert jnp.allclose(y3, y3_ref, atol=1e-3, rtol=1e-3), float(
        jnp.max(jnp.abs(y3 - y3_ref))
    )

    # --- bf16 fast path: f32 master params, bf16 MXU operands, f32 accumulate ---
    w_bf, b_bf = pack_linear_params(w2, b2, compute_dtype=jnp.bfloat16)
    y_bf = jax.block_until_ready(pallas_linear(x2, w_bf, b_bf, out_features=out_f2))
    x2_bf = x2.astype(jnp.bfloat16).astype(jnp.float32)
    w2_bf = w2.astype(jnp.bfloat16).astype(jnp.float32)
    y_bf_ref = jnp.einsum("...i,oi->...o", x2_bf, w2_bf, precision=HI) + b2
    assert y_bf.dtype == x2.dtype
    assert jnp.allclose(y_bf, y_bf_ref, atol=2e-3, rtol=2e-3), float(
        jnp.max(jnp.abs(y_bf - y_bf_ref))
    )

    print("KERNEL_OK")
</pallas_src>

<mosaic_0001>
module attributes {stable_mosaic.version = 11 : i64} {
  func.func @_linear_kernel_single_k(%arg0: i32, %arg1: i32, %arg2: memref<8x128xf32, #tpu.memory_space<vmem>>, %arg3: memref<128x128xf32, #tpu.memory_space<vmem>>, %arg4: memref<1x128xf32, #tpu.memory_space<vmem>>, %arg5: memref<8x128xf32, #tpu.memory_space<vmem>>) attributes {dimension_semantics = [#tpu.dimension_semantics<parallel>, #tpu.dimension_semantics<parallel>], iteration_bounds = array<i64: 2, 1>, scalar_prefetch = 0 : i64, scratch_operands = 0 : i64, tpu.core_type = #tpu.core_type<tc>, window_params = [{transform_indices = @transform_0, window_bounds = array<i64: 8, 128>}, {transform_indices = @transform_1, window_bounds = array<i64: 128, 128>}, {transform_indices = @transform_2, window_bounds = array<i64: 1, 128>}, {transform_indices = @transform_3, window_bounds = array<i64: 8, 128>}]} {
    %c0 = arith.constant 0 : index
    %c0_0 = arith.constant 0 : index
    %0 = vector.load %arg2[%c0, %c0_0] : memref<8x128xf32, #tpu.memory_space<vmem>>, vector<8x128xf32>
    %c0_1 = arith.constant 0 : index
    %c0_2 = arith.constant 0 : index
    %1 = vector.load %arg3[%c0_1, %c0_2] : memref<128x128xf32, #tpu.memory_space<vmem>>, vector<128x128xf32>
    %cst = arith.constant dense<0.000000e+00> : vector<8x128xf32>
    %2 = tpu.matmul %0, %1, %cst {dimension_numbers = #tpu.dot_dimension_numbers<[1], [0], [0], [1], [0, 0, 1, 1], [], []>} : vector<8x128xf32>, vector<128x128xf32>, vector<8x128xf32> -> vector<8x128xf32>
    %c0_3 = arith.constant 0 : index
    %c0_4 = arith.constant 0 : index
    %3 = vector.load %arg4[%c0_3, %c0_4] : memref<1x128xf32, #tpu.memory_space<vmem>>, vector<1x128xf32>
    %4 = vector.broadcast %3 : vector<1x128xf32> to vector<8x128xf32>
    %5 = arith.addf %2, %4 : vector<8x128xf32>
    %c0_5 = arith.constant 0 : index
    %c0_6 = arith.constant 0 : index
    %6 = vector.load %arg5[%c0_5, %c0_6] : memref<8x128xf32, #tpu.memory_space<vmem>>, vector<8x128xf32>
    tpu.vector_store %arg5[%c0_5, %c0_6], %5 {strides = array<i32>} : memref<8x128xf32, #tpu.memory_space<vmem>>, vector<8x128xf32>,
    return
  }
  func.func @transform_0(%arg0: i32, %arg1: i32) -> (i32, i32) {
    %c0_i32 = arith.constant 0 : i32
    %c0_i32_0 = arith.constant 0 : i32
    return %arg0, %c0_i32 : i32, i32
  }
  func.func @transform_1(%arg0: i32, %arg1: i32) -> (i32, i32) {
    %c0_i32 = arith.constant 0 : i32
    %c0_i32_0 = arith.constant 0 : i32
    return %c0_i32, %arg1 : i32, i32
  }
  func.func @transform_2(%arg0: i32, %arg1: i32) -> (i32, i32) {
    %c0_i32 = arith.constant 0 : i32
    %c0_i32_0 = arith.constant 0 : i32
    return %c0_i32, %arg1 : i32, i32
  }
  func.func @transform_3(%arg0: i32, %arg1: i32) -> (i32, i32) {
    %c0_i32 = arith.constant 0 : i32
    return %arg0, %arg1 : i32, i32
  }
}

</mosaic_0001>

<bundles_post_ra>
// kernel: pallas_linear.1
= control target key start
LH: loop header
LB: loop body
LE: loop exit
PB: predicated region body
PF: predicated region fallthrough
CT: control target
= control target key end

     0   :  { %8 = vsyncpa [#allocation3], 0  ;;  %s626_s12 = smov 0   ;;  %s628_s13 = smov 0   ;;  %s705_s0 = inlined_call_operand.vmem [shape: f32[16,128], index: 0, kind: input, shape index: {}]   ;;  %s706_s1 = inlined_call_operand.hbm [shape: f32[128,128], index: 1, kind: input, shape index: {}]   ;;  %s707_s2 = inlined_call_operand.vmem [shape: f32[1,128], index: 2, kind: input, shape index: {}]   ;;  %s708_s3 = inlined_call_operand.vmem [shape: f32[16,128], index: 3, kind: output, shape index: {}]  }
   0x1   :  { %s630_s14 = smov 0  }
   0x2 LB: > { %s415_s15 = sadd.s32 4294967295, %s598_s14   ;;  %s26_s16 = sadd.s32 1, %s594_s13  ;;  %s598_s14 = sphi %s630_s14, %s14_s14   ;;  %s594_s13 = sphi %s628_s13, %s718_s13   ;;  %s590_s12 = sphi %s626_s12, %s717_s12  }
   0x3   : > { %p28_p0 = scmp.ge.s32.totalorder %s26_s16, 2  ;;  %p417_p1 = scmp.ge.s32.totalorder %s598_s14, 1 }
   0x4   : > { %p137_p2 = scmp.lt.s32.totalorder %s598_s14, 3  ;;  %p651_p4 = scmp.eq.s32.totalorder %s415_s15, 0 }
   0x5   : > { %s720_s16 = smov (%p28_p0, %s26_s16), 0  ;;  %s600_s19 = smov [#allocation2]  }
   0x6   : > { %p647_p3 = pnand %p417_p1, %p137_p2  ;;  %s151_s20 = sshll.u32 %s600_s19, 4  ;;  %s152_s20 = int_to_ptr.vmem [resolvable:$true] %s151_s20 }
   0x7   : > { %s713_s18 = scalar_select %p651_p4, 1, 0 }
   0x8   : > { %s712_s17 = scalar_select %p647_p3, 1, 0 }
   0x9   : > { %p508_p5 = pneg %p647_p3  ;;  %s544_s24 = scalar_lea.hbm %s706_s1, 2048 }
   0xa   : > { %p545_p7 = scmp.ne.s32.totalorder %s706_s1, %s544_s24  ;;  %p551_p11 = scmp.lt.u32.totalorder %s544_s24, %s706_s1 }
   0xb   : > { %p659_p6 = pnand %p651_p4, %p508_p5 }
   0xd   : > { %p546_p8 = pneg %p659_p6 }
   0xf   : > { %p547_p9 = pnand %p546_p8, %p545_p7 }
  0x11   : > { %p548_p10 = pneg %p547_p9 }
  0x13   : > { %p553_p12 = pnand %p551_p11, %p548_p10 }
  0x15   : > { %556 = shalt.err (!%p553_p12)
}
  0x16   : > { %s557_s29 = scalar_lea.vmem %s152_s20, 2048  ;;  %p565_p2 = scmp.lt.s32.totalorder %s152_s20, %s152_s20 }
  0x17   : > { %p558_p13 = scmp.ne.s32.totalorder %s152_s20, %s557_s29  ;;  %p566_p5 = scmp.lt.s32.totalorder %s557_s29, %s557_s29 }
  0x19   : > { %p560_p0 = pnand %p558_p13, %p546_p8  ;;  %p567_p4 = por %p566_p5, %p565_p2 }
  0x1b   : > { %p561_p1 = pneg %p560_p0 }
  0x1d   : > { %p568_p3 = pnand %p567_p4, %p561_p1 }
  0x1f   : > { %571 = shalt.err (!%p568_p3)
}
  0x20   : > { %s601_s30 = smov 128   ;;  %s602_s4 = smov 8  }
  0x21   : > { %511 = dma.hbm_to_vmem [thread:$0]  (!%p659_p6), %s706_s1, 2048, %s152_s20, [#allocation3], %s601_s30, %s601_s30, %s602_s4  }
  0x22   : > { %p715_p7 = scmp.ne.s32.totalorder %s712_s17, 0 }
  0x23   : > { %p716_p9 = scmp.ne.s32.totalorder (!%p715_p7), %s713_s18, 0 }
  0x24   : > { %180 = sbr.rel (%p715_p7) target bundleno = 294 (0x126), region = 32 }
  0x2b   : > { %585 = dma.done.wait (%p716_p9), [#allocation3], 2048  }
  0x2c   : > { %587 = vsyncadd (%p716_p9), [#allocation3], 4294965248  ;;  %v603_v0 = vmov 0.0|0.0   ;;  %vm604_vm0 = vmmov 0   ;;  %v605_v1 = vmov 0.0   ;;  %v223_v2 = vld [vmem:[#allocation2] sm:$0xff] }
  0x2d   : > { %480 = vmatprep.subr.bf16.mxu0 %v603_v0  ;;  %477 = vmatprep.mubr.msk.f32.mxu0 %vm604_vm0, %v605_v1  ;;  %v224_v3 = vld [vmem:[#allocation2 + $0x8] sm:$0xff]  ;;  %v225_v4 = vld [vmem:[#allocation2 + $0x10] sm:$0xff]  ;;  %v226_v6 = vld [vmem:[#allocation2 + $0x18] sm:$0xff]  ;;  %p208_p3 = scmp.lt.s32.totalorder %s590_s12, 1 }
  0x2e   : > { %v481_v5 = vpack.c.bf16 %v224_v3, %v223_v2  ;;  %v484_v7 = vpack.c.bf16 %v226_v6, %v225_v4  ;;  %v227_v8 = vld [vmem:[#allocation2 + $0x20] sm:$0xff]  ;;  %v228_v9 = vld [vmem:[#allocation2 + $0x28] sm:$0xff]  ;;  %v229_v11 = vld [vmem:[#allocation2 + $0x30] sm:$0xff] }
  0x2f   : > { %v487_v10 = vpack.c.bf16 %v228_v9, %v227_v8  ;;  %v230_v12 = vld [vmem:[#allocation2 + $0x38] sm:$0xff]  ;;  %v231_v14 = vld [vmem:[#allocation2 + $0x40] sm:$0xff]  ;;  %v232_v15 = vld [vmem:[#allocation2 + $0x48] sm:$0xff]  ;;  %s722_s12 = smov (!%p208_p3, %s590_s12), 1 }
  0x30   : > { %482 = vmatpush3.bf16.msra.mxu0 %v481_v5  ;;  %v490_v13 = vpack.c.bf16 %v230_v12, %v229_v11  ;;  %v493_v16 = vpack.c.bf16 %v232_v15, %v231_v14  ;;  %v233_v17 = vld [vmem:[#allocation2 + $0x50] sm:$0xff]  ;;  %v234_v18 = vld [vmem:[#allocation2 + $0x58] sm:$0xff]  ;;  %v235_v20 = vld [vmem:[#allocation2 + $0x60] sm:$0xff]  ;;  %s423_s7 = sshll.u32 %s722_s12, 3 }
  0x31   : > { %483 = vmatprep.subr.bf16.mxu0 %v603_v0  ;;  %v496_v19 = vpack.c.bf16 %v234_v18, %v233_v17  ;;  %v236_v21 = vld [vmem:[#allocation2 + $0x68] sm:$0xff]  ;;  %v237_v23 = vld [vmem:[#allocation2 + $0x70] sm:$0xff]  ;;  %v238_v24 = vld [vmem:[#allocation2 + $0x78] sm:$0xff]  ;;  %s211_s10 = scalar_lea.vmem %s705_s0, %s423_s7  ;;  %s221_s19 = scalar_lea.vmem %s708_s3, %s423_s7 }
  0x32   : > { %v499_v22 = vpack.c.bf16 %v236_v21, %v235_v20  ;;  %v502_v25 = vpack.c.bf16 %v238_v24, %v237_v23  ;;  %v222_v26 = vld [vmem:[%s211_s10] sm:$0xff] }
  0x33   : > { %v425_v27 = vld [vmem:[%s707_s2] ss:$0 sm:$0xff] }
  0x34   : > { %485 = vmatpush3.bf16.msra.mxu0 %v484_v7 }
  0x35   : > { %486 = vmatprep.subr.bf16.mxu0 %v603_v0 }
  0x38   : > { %488 = vmatpush3.bf16.msra.mxu0 %v487_v10 }
  0x39   : > { %489 = vmatprep.subr.bf16.mxu0 %v603_v0 }
  0x3c   : > { %491 = vmatpush3.bf16.msra.mxu0 %v490_v13 }
  0x3d   : > { %492 = vmatprep.subr.bf16.mxu0 %v603_v0 }
  0x40   : > { %494 = vmatpush3.bf16.msra.mxu0 %v493_v16 }
  0x41   : > { %495 = vmatprep.subr.bf16.mxu0 %v603_v0 }
  0x44   : > { %497 = vmatpush3.bf16.msra.mxu0 %v496_v19 }
  0x45   : > { %498 = vmatprep.subr.bf16.mxu0 %v603_v0 }
  0x48   : > { %500 = vmatpush3.bf16.msra.mxu0 %v499_v22 }
  0x49   : > { %501 = vmatprep.subr.bf16.mxu0 %v603_v0 }
  0x4c   : > { %503 = vmatpush3.bf16.msra.mxu0 %v502_v25 }
  0x4f   : > { %478 = vmatmul.mubr.f32.vlgmr.msra.gmra.mrb[0].mxu0 %v222_v26 }
 0x122   : > { %v312_v28 = vpop.f32.mrb[0].mxu0 }
 0x123   : > { %v313_v29 = vadd.f32 %v425_v27, %v312_v28  ;;  %v479_v30 = vpop.f32.mrb[1].mxu0 }
 0x125   : > { %316 = vst [vmem:[%s221_s19] sm:$0xff] %v313_v29 }
 0x126 PF: > { %s14_s14 = sadd.s32 1, %s598_s14   ;;  %s717_s12 = smov %s594_s13 }
 0x127   : > { %p11_p4 = scmp.ge.s32.totalorder %s14_s14, 4   ;;  %s718_s13 = smov %s720_s16 }
 0x129   :  { %13 = sbr.rel (!%p11_p4) target bundleno = 2 (0x2), region = 71 }
 0x130   :  { %342 = vsyncpa [#allocation3], 1 }
 0x131   :  { %344 = vsyncpa [#allocation3 + $0x1], 1 }

</bundles_post_ra>
